<compile_context>
chip_gen: v5e
topology: v5e:2x2
jax: 0.10.0
libtpu: 0.0.40
codegen_flags: <defaults>
</compile_context>

<pallas_src>
from functools import partial

import jax
import jax.numpy as jnp
import numpy as np
from jax import lax
from jax.experimental import pallas as pl
from jax.experimental.pallas import tpu as pltpu


def bottleneck_kernel(x_ref, w1_ref, b1_ref, w2_ref, b2_ref, w3_ref, b3_ref,
                      out_ref, ypad_ref, *, img_w):
    """One image of the Bottleneck forward in channel-major (C, H*W) layout.

    x_ref    : (1, Cin, S)         input image, S = H*W on the lane axis
    w1_ref   : (width, Cin)        conv1 1x1 weight, BN1 scale folded in
    w2_ref   : (9, width, width)   conv2 3x3 weight per tap (kh*3+kw), BN2 folded
    w3_ref   : (Cout, width)       conv3 1x1 weight, BN3 scale folded in
    b*_ref   : (C, 1) f32          folded BN biases
    out_ref  : (1, Cout, S)        output image (activation dtype)
    ypad_ref : (width, S + 2*PAD)  scratch: bn1(conv1(x)) with zero lane halos
    """
    _, Cin, S = x_ref.shape
    width = w1_ref.shape[0]
    Cout = w3_ref.shape[0]
    cdt = ypad_ref.dtype
    f32 = jnp.float32
    pad = (ypad_ref.shape[1] - S) // 2          # = 128 >= img_w + 1

    # ---- conv1 (1x1) + BN1 ; sn1 = Identity ----
    x_in = x_ref[0]                                             # (Cin, S)
    y1 = jnp.dot(w1_ref[...], x_in.astype(cdt),
                 preferred_element_type=f32) + b1_ref[...]      # (width, S) f32

    # Zero-edged buffer for the 3x3 taps: the halo strips stay zero so any tap
    # whose source row falls outside the image reads zeros "for free".
    # (3 aligned stores per step; re-zeroed every step so the grid axis can stay
    #  "parallel" across TensorCores.)
    ypad_ref[:, :pad] = jnp.zeros((width, pad), cdt)
    ypad_ref[:, pad + S:] = jnp.zeros((width, ypad_ref.shape[1] - pad - S), cdt)
    ypad_ref[:, pad:pad + S] = y1.astype(cdt)

    # Column masks (0/1 on the lane axis): a +/-1 column shift in the flattened
    # S = H*W coordinate wraps across row edges, so kw != 1 taps zero one column.
    col = lax.broadcasted_iota(jnp.int32, (1, S), 1) % img_w
    keep_l = (col != 0).astype(cdt)              # for kw == 0 taps
    keep_r = (col != img_w - 1).astype(cdt)      # for kw == 2 taps

    # ---- conv2 (3x3, pad 1) + BN2 : 9 accumulating dots into an f32 accumulator ----
    acc = jnp.zeros((width, S), f32)
    for kh in range(3):
        for kw in range(3):
            d = (kh - 1) * img_w + (kw - 1)
            opnd = ypad_ref[:, pad + d:pad + d + S]        # lane-shifted window
            if kw == 0:
                opnd = opnd * keep_l
            elif kw == 2:
                opnd = opnd * keep_r
            acc = acc + jnp.dot(w2_ref[kh * 3 + kw], opnd,
                                preferred_element_type=f32)
    y2 = acc + b2_ref[...]                                      # (width, S) f32

    # ---- conv3 (1x1) + BN3 ; sn3 = Identity ----
    y3 = jnp.dot(w3_ref[...], y2.astype(cdt),
                 preferred_element_type=f32) + b3_ref[...]      # (Cout, S) f32

    # ---- SEW 'ADD' (sew_cnf=None -> ADD), identity = x (downsample=None) ----
    out = y3 + x_in.astype(f32)                  # Cin == Cout ; identity kept f32
    out_ref[...] = out.reshape(1, Cout, S).astype(out_ref.dtype)


@partial(jax.jit, static_argnames=("compute_dtype",))
def bottleneck_forward(x_nchw, w1_oihw, s1, b1, w2_oihw, s2, b2, w3_oihw, s3, b3,
                       *, compute_dtype=jnp.float32):
    N, Cin, H, W = x_nchw.shape
    width = w1_oihw.shape[0]
    Cout = w3_oihw.shape[0]
    if Cin != Cout:
        raise ValueError("downsample=None requires inplanes == planes * expansion")
    S = H * W
    PAD = 128  # lane halo around the conv2 buffer; keeps the interior store aligned
    # TODO(synk): for feature maps wider than 127 columns, switch to a row-tiled
    # grid (overlapping row blocks) instead of whole-image-per-step.
    if W + 1 > PAD:
        raise ValueError("image width > 127 not supported by this demo kernel")
    cdt = compute_dtype
    f32 = jnp.float32

    # NCHW kept end-to-end: (N, Cin, H*W) is a free reshape; channels on the
    # sublane axis, flattened spatial on the lane axis (lane-dense for H*W >= 128).
    x = x_nchw.reshape(N, Cin, S)

    # Fold the BN scales into the conv weights (per output channel = matrix row);
    # only the bias adds remain in the kernel.
    w1_k = (w1_oihw[:, :, 0, 0] * s1[:, None]).astype(cdt)                     # (width, Cin)
    w2_k = (jnp.transpose(w2_oihw, (2, 3, 0, 1)).reshape(9, width, width)
            * s2[None, :, None]).astype(cdt)                                   # (9, width, width)
    w3_k = (w3_oihw[:, :, 0, 0] * s3[:, None]).astype(cdt)                     # (Cout, width)
    bcol = lambda v: v.reshape(-1, 1).astype(f32)

    const2 = lambda n: (0, 0)
    grid_spec = pltpu.PrefetchScalarGridSpec(
        num_scalar_prefetch=0,
        grid=(N,),
        in_specs=[
            pl.BlockSpec((1, Cin, S), lambda n: (n, 0, 0)),        # x image
            pl.BlockSpec((width, Cin), const2),                    # w1 (BN1 folded)
            pl.BlockSpec((width, 1), const2),                      # b1
            pl.BlockSpec((9, width, width), lambda n: (0, 0, 0)),  # w2 (BN2 folded)
            pl.BlockSpec((width, 1), const2),                      # b2
            pl.BlockSpec((Cout, width), const2),                   # w3 (BN3 folded)
            pl.BlockSpec((Cout, 1), const2),                       # b3
        ],
        out_specs=pl.BlockSpec((1, Cout, S), lambda n: (n, 0, 0)),
        scratch_shapes=[pltpu.VMEM((width, S + 2 * PAD), cdt)],
    )

    out_flat = pl.pallas_call(
        partial(bottleneck_kernel, img_w=W),
        out_shape=jax.ShapeDtypeStruct((N, Cout, S), x_nchw.dtype),  # activation dtype
        grid_spec=grid_spec,
        compiler_params=pltpu.CompilerParams(
            dimension_semantics=("parallel",),
            # demo footprint is well under 1 MiB; re-derive for real feature maps
            vmem_limit_bytes=32 * 1024 * 1024,
        ),
    )(x, w1_k, bcol(b1), w2_k, bcol(b2), w3_k, bcol(b3))

    return out_flat.reshape(N, Cout, H, W)        # free reshape, already NCHW


def reference_forward(x, w1_oihw, s1, b1, w2_oihw, s2, b2, w3_oihw, s3, b3):
    dn = ('NCHW', 'OIHW', 'NCHW')
    bn = lambda y, s, b: y * s.reshape(1, -1, 1, 1) + b.reshape(1, -1, 1, 1)
    y = lax.conv_general_dilated(x, w1_oihw, (1, 1), 'SAME', dimension_numbers=dn)
    y = bn(y, s1, b1)
    y = lax.conv_general_dilated(y, w2_oihw, (1, 1), 'SAME', dimension_numbers=dn)
    y = bn(y, s2, b2)
    y = lax.conv_general_dilated(y, w3_oihw, (1, 1), 'SAME', dimension_numbers=dn)
    y = bn(y, s3, b3)
    return y + x   # sew_cnf=None -> ADD ; downsample=None ; node=Identity


if __name__ == "__main__":
    # Bottleneck(inplanes=4*planes, planes): width = planes, out channels = 4*planes.
    N, planes, H, W = 2, 8, 16, 16
    width = planes
    Cin = Cout = 4 * planes
    eps = 1e-5

    key = jax.random.PRNGKey(0)
    ks = jax.random.split(key, 16)

    x = jax.random.normal(ks[0], (N, Cin, H, W), jnp.float32)

    # conv weights in PyTorch OIHW layout, no bias
    w1_oihw = 0.2 * jax.random.normal(ks[1], (width, Cin, 1, 1), jnp.float32)
    w2_oihw = 0.2 * jax.random.normal(ks[2], (width, width, 3, 3), jnp.float32)
    w3_oihw = 0.2 * jax.random.normal(ks[3], (Cout, width, 1, 1), jnp.float32)

    # deterministic inference-form BatchNorm params folded to scale / bias
    def bn_fold(kg, kb, km, kv, c):
        gamma = 0.5 + jax.random.uniform(kg, (c,), jnp.float32)
        beta = 0.1 * jax.random.normal(kb, (c,), jnp.float32)
        mean = 0.1 * jax.random.normal(km, (c,), jnp.float32)
        var = 0.5 + jax.random.uniform(kv, (c,), jnp.float32)
        scale = gamma / jnp.sqrt(var + eps)
        bias = beta - mean * scale
        return scale, bias

    s1, b1 = bn_fold(ks[4], ks[5], ks[6], ks[7], width)
    s2, b2 = bn_fold(ks[8], ks[9], ks[10], ks[11], width)
    s3, b3 = bn_fold(ks[12], ks[13], ks[14], ks[15], Cout)

    ref = reference_forward(x, w1_oihw, s1, b1, w2_oihw, s2, b2, w3_oihw, s3, b3)

    # f32 path (tight numerical check)
    out = bottleneck_forward(x, w1_oihw, s1, b1, w2_oihw, s2, b2, w3_oihw, s3, b3,
                             compute_dtype=jnp.float32)
    out = jax.block_until_ready(out)
    np.testing.assert_allclose(np.asarray(out), np.asarray(ref), rtol=1e-4, atol=1e-4)

    # bf16 matmul-input path (v6e/v7x MXU rate); f32 accumulation / biases /
    # residual identity (looser check)
    out_bf16 = bottleneck_forward(x, w1_oihw, s1, b1, w2_oihw, s2, b2, w3_oihw, s3, b3,
                                  compute_dtype=jnp.bfloat16)
    out_bf16 = jax.block_until_ready(out_bf16)
    np.testing.assert_allclose(np.asarray(out_bf16), np.asarray(ref), rtol=1e-1, atol=1e-1)

    print("KERNEL_OK")
</pallas_src>

<mosaic_0001>
module attributes {stable_mosaic.version = 11 : i64} {
  func.func @bottleneck_kernel(%arg0: i32, %arg1: memref<1x32x256xf32, #tpu.memory_space<vmem>>, %arg2: memref<8x32xf32, #tpu.memory_space<vmem>>, %arg3: memref<8x1xf32, #tpu.memory_space<vmem>>, %arg4: memref<9x8x8xf32, #tpu.memory_space<vmem>>, %arg5: memref<8x1xf32, #tpu.memory_space<vmem>>, %arg6: memref<32x8xf32, #tpu.memory_space<vmem>>, %arg7: memref<32x1xf32, #tpu.memory_space<vmem>>, %arg8: memref<1x32x256xf32, #tpu.memory_space<vmem>>, %arg9: memref<8x512xf32, #tpu.memory_space<vmem>>) attributes {dimension_semantics = [#tpu.dimension_semantics<parallel>], iteration_bounds = array<i64: 2>, scalar_prefetch = 0 : i64, scratch_operands = 1 : i64, tpu.core_type = #tpu.core_type<tc>, window_params = [{transform_indices = @transform_0, window_bounds = array<i64: 1, 32, 256>}, {pipeline_mode = #tpu.pipeline_mode<synchronous>, transform_indices = @transform_1, window_bounds = array<i64: 8, 32>}, {pipeline_mode = #tpu.pipeline_mode<synchronous>, transform_indices = @transform_2, window_bounds = array<i64: 8, 1>}, {pipeline_mode = #tpu.pipeline_mode<synchronous>, transform_indices = @transform_3, window_bounds = array<i64: 9, 8, 8>}, {pipeline_mode = #tpu.pipeline_mode<synchronous>, transform_indices = @transform_4, window_bounds = array<i64: 8, 1>}, {pipeline_mode = #tpu.pipeline_mode<synchronous>, transform_indices = @transform_5, window_bounds = array<i64: 32, 8>}, {pipeline_mode = #tpu.pipeline_mode<synchronous>, transform_indices = @transform_6, window_bounds = array<i64: 32, 1>}, {transform_indices = @transform_7, window_bounds = array<i64: 1, 32, 256>}]} {
    %c0 = arith.constant 0 : index
    %c0_0 = arith.constant 0 : index
    %c0_1 = arith.constant 0 : index
    %0 = vector.load %arg1[%c0, %c0_0, %c0_1] : memref<1x32x256xf32, #tpu.memory_space<vmem>>, vector<1x32x256xf32>
    %1 = vector.shape_cast %0 : vector<1x32x256xf32> to vector<32x256xf32>
    %c0_2 = arith.constant 0 : index
    %c0_3 = arith.constant 0 : index
    %2 = vector.load %arg2[%c0_2, %c0_3] : memref<8x32xf32, #tpu.memory_space<vmem>>, vector<8x32xf32>
    %cst = arith.constant dense<0.000000e+00> : vector<8x256xf32>
    %3 = tpu.matmul %2, %1, %cst {dimension_numbers = #tpu.dot_dimension_numbers<[1], [0], [0], [1], [0, 0, 1, 1], [], []>} : vector<8x32xf32>, vector<32x256xf32>, vector<8x256xf32> -> vector<8x256xf32>
    %c0_4 = arith.constant 0 : index
    %c0_5 = arith.constant 0 : index
    %4 = vector.load %arg3[%c0_4, %c0_5] : memref<8x1xf32, #tpu.memory_space<vmem>>, vector<8x1xf32>
    %5 = vector.broadcast %4 : vector<8x1xf32> to vector<8x256xf32>
    %6 = arith.addf %3, %5 : vector<8x256xf32>
    %cst_6 = arith.constant 0.000000e+00 : f32
    %7 = vector.broadcast %cst_6 : f32 to vector<8x128xf32>
    %c0_7 = arith.constant 0 : index
    %c0_8 = arith.constant 0 : index
    %8 = vector.load %arg9[%c0_7, %c0_8] : memref<8x512xf32, #tpu.memory_space<vmem>>, vector<8x128xf32>
    tpu.vector_store %arg9[%c0_7, %c0_8], %7 {strides = array<i32>} : memref<8x512xf32, #tpu.memory_space<vmem>>, vector<8x128xf32>,
    %cst_9 = arith.constant 0.000000e+00 : f32
    %9 = vector.broadcast %cst_9 : f32 to vector<8x128xf32>
    %c0_10 = arith.constant 0 : index
    %c384 = arith.constant 384 : index
    %10 = vector.load %arg9[%c0_10, %c384] : memref<8x512xf32, #tpu.memory_space<vmem>>, vector<8x128xf32>
    tpu.vector_store %arg9[%c0_10, %c384], %9 {strides = array<i32>} : memref<8x512xf32, #tpu.memory_space<vmem>>, vector<8x128xf32>,
    %c0_11 = arith.constant 0 : index
    %c128 = arith.constant 128 : index
    %11 = vector.load %arg9[%c0_11, %c128] : memref<8x512xf32, #tpu.memory_space<vmem>>, vector<8x256xf32>
    tpu.vector_store %arg9[%c0_11, %c128], %6 {strides = array<i32>} : memref<8x512xf32, #tpu.memory_space<vmem>>, vector<8x256xf32>,
    %12 = tpu.iota {dimensions = array<i32: 1>} : vector<1x256xi32>
    %c16_i32 = arith.constant 16 : i32
    %c0_i32 = arith.constant 0 : i32
    %13 = arith.cmpi eq, %c16_i32, %c0_i32 : i32
    %c1_i32 = arith.constant 1 : i32
    %14 = arith.select %13, %c1_i32, %c16_i32 : i32
    %15 = vector.broadcast %14 : i32 to vector<1x256xi32>
    %16 = arith.remsi %12, %15 : vector<1x256xi32>
    %c0_i32_12 = arith.constant 0 : i32
    %17 = vector.broadcast %c0_i32_12 : i32 to vector<1x256xi32>
    %18 = arith.cmpi ne, %16, %17 : vector<1x256xi32>
    %c0_i32_13 = arith.constant 0 : i32
    %19 = vector.broadcast %c0_i32_13 : i32 to vector<1x256xi32>
    %20 = arith.cmpi slt, %16, %19 : vector<1x256xi32>
    %c0_i32_14 = arith.constant 0 : i32
    %21 = arith.cmpi slt, %14, %c0_i32_14 : i32
    %22 = vector.broadcast %21 : i1 to vector<1x256xi1>
    %23 = vector.broadcast %22 : vector<1x256xi1> to vector<1x256xi1>
    %24 = arith.xori %20, %23 : vector<1x256xi1>
    %25 = arith.andi %24, %18 : vector<1x256xi1>
    %26 = vector.broadcast %14 : i32 to vector<1x256xi32>
    %27 = arith.addi %16, %26 : vector<1x256xi32>
    %28 = arith.select %25, %27, %16 : vector<1x256xi1>, vector<1x256xi32>
    %c0_i32_15 = arith.constant 0 : i32
    %29 = vector.broadcast %c0_i32_15 : i32 to vector<1x256xi32>
    %30 = arith.cmpi ne, %28, %29 : vector<1x256xi32>
    %31 = arith.extui %30 : vector<1x256xi1> to vector<1x256xi32>
    %32 = arith.sitofp %31 : vector<1x256xi32> to vector<1x256xf32>
    %c15_i32 = arith.constant 15 : i32
    %33 = vector.broadcast %c15_i32 : i32 to vector<1x256xi32>
    %34 = arith.cmpi ne, %28, %33 : vector<1x256xi32>
    %35 = arith.extui %34 : vector<1x256xi1> to vector<1x256xi32>
    %36 = arith.sitofp %35 : vector<1x256xi32> to vector<1x256xf32>
    %cst_16 = arith.constant 0.000000e+00 : f32
    %37 = vector.broadcast %cst_16 : f32 to vector<8x256xf32>
    %c0_17 = arith.constant 0 : index
    %c111 = arith.constant 111 : index
    %38 = vector.load %arg9[%c0_17, %c111] : memref<8x512xf32, #tpu.memory_space<vmem>>, vector<8x256xf32>
    %39 = vector.broadcast %32 : vector<1x256xf32> to vector<8x256xf32>
    %40 = arith.mulf %38, %39 : vector<8x256xf32>
    %c0_18 = arith.constant 0 : index
    %c0_19 = arith.constant 0 : index
    %c0_20 = arith.constant 0 : index
    %41 = vector.load %arg4[%c0_18, %c0_19, %c0_20] : memref<9x8x8xf32, #tpu.memory_space<vmem>>, vector<1x8x8xf32>
    %42 = vector.shape_cast %41 : vector<1x8x8xf32> to vector<8x8xf32>
    %cst_21 = arith.constant dense<0.000000e+00> : vector<8x256xf32>
    %43 = tpu.matmul %42, %40, %cst_21 {dimension_numbers = #tpu.dot_dimension_numbers<[1], [0], [0], [1], [0, 0, 1, 1], [], []>} : vector<8x8xf32>, vector<8x256xf32>, vector<8x256xf32> -> vector<8x256xf32>
    %44 = arith.addf %37, %43 : vector<8x256xf32>
    %c0_22 = arith.constant 0 : index
    %c112 = arith.constant 112 : index
    %45 = vector.load %arg9[%c0_22, %c112] : memref<8x512xf32, #tpu.memory_space<vmem>>, vector<8x256xf32>
    %c1 = arith.constant 1 : index
    %c0_23 = arith.constant 0 : index
    %c0_24 = arith.constant 0 : index
    %46 = vector.load %arg4[%c1, %c0_23, %c0_24] : memref<9x8x8xf32, #tpu.memory_space<vmem>>, vector<1x8x8xf32>
    %47 = vector.shape_cast %46 : vector<1x8x8xf32> to vector<8x8xf32>
    %cst_25 = arith.constant dense<0.000000e+00> : vector<8x256xf32>
    %48 = tpu.matmul %47, %45, %cst_25 {dimension_numbers = #tpu.dot_dimension_numbers<[1], [0], [0], [1], [0, 0, 1, 1], [], []>} : vector<8x8xf32>, vector<8x256xf32>, vector<8x256xf32> -> vector<8x256xf32>
    %49 = arith.addf %44, %48 : vector<8x256xf32>
    %c0_26 = arith.constant 0 : index
    %c113 = arith.constant 113 : index
    %50 = vector.load %arg9[%c0_26, %c113] : memref<8x512xf32, #tpu.memory_space<vmem>>, vector<8x256xf32>
    %51 = vector.broadcast %36 : vector<1x256xf32> to vector<8x256xf32>
    %52 = arith.mulf %50, %51 : vector<8x256xf32>
    %c2 = arith.constant 2 : index
    %c0_27 = arith.constant 0 : index
    %c0_28 = arith.constant 0 : index
    %53 = vector.load %arg4[%c2, %c0_27, %c0_28] : memref<9x8x8xf32, #tpu.memory_space<vmem>>, vector<1x8x8xf32>
    %54 = vector.shape_cast %53 : vector<1x8x8xf32> to vector<8x8xf32>
    %cst_29 = arith.constant dense<0.000000e+00> : vector<8x256xf32>
    %55 = tpu.matmul %54, %52, %cst_29 {dimension_numbers = #tpu.dot_dimension_numbers<[1], [0], [0], [1], [0, 0, 1, 1], [], []>} : vector<8x8xf32>, vector<8x256xf32>, vector<8x256xf32> -> vector<8x256xf32>
    %56 = arith.addf %49, %55 : vector<8x256xf32>
    %c0_30 = arith.constant 0 : index
    %c127 = arith.constant 127 : index
    %57 = vector.load %arg9[%c0_30, %c127] : memref<8x512xf32, #tpu.memory_space<vmem>>, vector<8x256xf32>
    %58 = vector.broadcast %32 : vector<1x256xf32> to vector<8x256xf32>
    %59 = arith.mulf %57, %58 : vector<8x256xf32>
    %c3 = arith.constant 3 : index
    %c0_31 = arith.constant 0 : index
    %c0_32 = arith.constant 0 : index
    %60 = vector.load %arg4[%c3, %c0_31, %c0_32] : memref<9x8x8xf32, #tpu.memory_space<vmem>>, vector<1x8x8xf32>
    %61 = vector.shape_cast %60 : vector<1x8x8xf32> to vector<8x8xf32>
    %cst_33 = arith.constant dense<0.000000e+00> : vector<8x256xf32>
    %62 = tpu.matmul %61, %59, %cst_33 {dimension_numbers = #tpu.dot_dimension_numbers<[1], [0], [0], [1], [0, 0, 1, 1], [], []>} : vector<8x8xf32>, vector<8x256xf32>, vector<8x256xf32> -> vector<8x256xf32>
    %63 = arith.addf %56, %62 : vector<8x256xf32>
    %c0_34 = arith.constant 0 : index
    %c128_35 = arith.constant 128 : index
    %64 = vector.load %arg9[%c0_34, %c128_35] : memref<8x512xf32, #tpu.memory_space<vmem>>, vector<8x256xf32>
    %c4 = arith.constant 4 : index
    %c0_36 = arith.constant 0 : index
    %c0_37 = arith.constant 0 : index
    %65 = vector.load %arg4[%c4, %c0_36, %c0_37] : memref<9x8x8xf32, #tpu.memory_space<vmem>>, vector<1x8x8xf32>
    %66 = vector.shape_cast %65 : vector<1x8x8xf32> to vector<8x8xf32>
    %cst_38 = arith.constant dense<0.000000e+00> : vector<8x256xf32>
    %67 = tpu.matmul %66, %64, %cst_38 {dimension_numbers = #tpu.dot_dimension_numbers<[1], [0], [0], [1], [0, 0, 1, 1], [], []>} : vector<8x8xf32>, vector<8x256xf32>, vector<8x256xf32> -> vector<8x256xf32>
    %68 = arith.addf %63, %67 : vector<8x256xf32>
    %c0_39 = arith.constant 0 : index
    %c129 = arith.constant 129 : index
    %69 = vector.load %arg9[%c0_39, %c129] : memref<8x512xf32, #tpu.memory_space<vmem>>, vector<8x256xf32>
    %70 = vector.broadcast %36 : vector<1x256xf32> to vector<8x256xf32>
    %71 = arith.mulf %69, %70 : vector<8x256xf32>
    %c5 = arith.constant 5 : index
    %c0_40 = arith.constant 0 : index
    %c0_41 = arith.constant 0 : index
    %72 = vector.load %arg4[%c5, %c0_40, %c0_41] : memref<9x8x8xf32, #tpu.memory_space<vmem>>, vector<1x8x8xf32>
    %73 = vector.shape_cast %72 : vector<1x8x8xf32> to vector<8x8xf32>
    %cst_42 = arith.constant dense<0.000000e+00> : vector<8x256xf32>
    %74 = tpu.matmul %73, %71, %cst_42 {dimension_numbers = #tpu.dot_dimension_numbers<[1], [0], [0], [1], [0, 0, 1, 1], [], []>} : vector<8x8xf32>, vector<8x256xf32>, vector<8x256xf32> -> vector<8x256xf32>
    %75 = arith.addf %68, %74 : vector<8x256xf32>
    %c0_43 = arith.constant 0 : index
    %c143 = arith.constant 143 : index
    %76 = vector.load %arg9[%c0_43, %c143] : memref<8x512xf32, #tpu.memory_space<vmem>>, vector<8x256xf32>
    %77 = vector.broadcast %32 : vector<1x256xf32> to vector<8x256xf32>
    %78 = arith.mulf %76, %77 : vector<8x256xf32>
    %c6 = arith.constant 6 : index
    %c0_44 = arith.constant 0 : index
    %c0_45 = arith.constant 0 : index
    %79 = vector.load %arg4[%c6, %c0_44, %c0_45] : memref<9x8x8xf32, #tpu.memory_space<vmem>>, vector<1x8x8xf32>
    %80 = vector.shape_cast %79 : vector<1x8x8xf32> to vector<8x8xf32>
    %cst_46 = arith.constant dense<0.000000e+00> : vector<8x256xf32>
    %81 = tpu.matmul %80, %78, %cst_46 {dimension_numbers = #tpu.dot_dimension_numbers<[1], [0], [0], [1], [0, 0, 1, 1], [], []>} : vector<8x8xf32>, vector<8x256xf32>, vector<8x256xf32> -> vector<8x256xf32>
    %82 = arith.addf %75, %81 : vector<8x256xf32>
    %c0_47 = arith.constant 0 : index
    %c144 = arith.constant 144 : index
    %83 = vector.load %arg9[%c0_47, %c144] : memref<8x512xf32, #tpu.memory_space<vmem>>, vector<8x256xf32>
    %c7 = arith.constant 7 : index
    %c0_48 = arith.constant 0 : index
    %c0_49 = arith.constant 0 : index
    %84 = vector.load %arg4[%c7, %c0_48, %c0_49] : memref<9x8x8xf32, #tpu.memory_space<vmem>>, vector<1x8x8xf32>
    %85 = vector.shape_cast %84 : vector<1x8x8xf32> to vector<8x8xf32>
    %cst_50 = arith.constant dense<0.000000e+00> : vector<8x256xf32>
    %86 = tpu.matmul %85, %83, %cst_50 {dimension_numbers = #tpu.dot_dimension_numbers<[1], [0], [0], [1], [0, 0, 1, 1], [], []>} : vector<8x8xf32>, vector<8x256xf32>, vector<8x256xf32> -> vector<8x256xf32>
    %87 = arith.addf %82, %86 : vector<8x256xf32>
    %c0_51 = arith.constant 0 : index
    %c145 = arith.constant 145 : index
    %88 = vector.load %arg9[%c0_51, %c145] : memref<8x512xf32, #tpu.memory_space<vmem>>, vector<8x256xf32>
    %89 = vector.broadcast %36 : vector<1x256xf32> to vector<8x256xf32>
    %90 = arith.mulf %88, %89 : vector<8x256xf32>
    %c8 = arith.constant 8 : index
    %c0_52 = arith.constant 0 : index
    %c0_53 = arith.constant 0 : index
    %91 = vector.load %arg4[%c8, %c0_52, %c0_53] : memref<9x8x8xf32, #tpu.memory_space<vmem>>, vector<1x8x8xf32>
    %92 = vector.shape_cast %91 : vector<1x8x8xf32> to vector<8x8xf32>
    %cst_54 = arith.constant dense<0.000000e+00> : vector<8x256xf32>
    %93 = tpu.matmul %92, %90, %cst_54 {dimension_numbers = #tpu.dot_dimension_numbers<[1], [0], [0], [1], [0, 0, 1, 1], [], []>} : vector<8x8xf32>, vector<8x256xf32>, vector<8x256xf32> -> vector<8x256xf32>
    %94 = arith.addf %87, %93 : vector<8x256xf32>
    %c0_55 = arith.constant 0 : index
    %c0_56 = arith.constant 0 : index
    %95 = vector.load %arg5[%c0_55, %c0_56] : memref<8x1xf32, #tpu.memory_space<vmem>>, vector<8x1xf32>
    %96 = vector.broadcast %95 : vector<8x1xf32> to vector<8x256xf32>
    %97 = arith.addf %94, %96 : vector<8x256xf32>
    %c0_57 = arith.constant 0 : index
    %c0_58 = arith.constant 0 : index
    %98 = vector.load %arg6[%c0_57, %c0_58] : memref<32x8xf32, #tpu.memory_space<vmem>>, vector<32x8xf32>
    %cst_59 = arith.constant dense<0.000000e+00> : vector<32x256xf32>
    %99 = tpu.matmul %98, %97, %cst_59 {dimension_numbers = #tpu.dot_dimension_numbers<[1], [0], [0], [1], [0, 0, 1, 1], [], []>} : vector<32x8xf32>, vector<8x256xf32>, vector<32x256xf32> -> vector<32x256xf32>
    %c0_60 = arith.constant 0 : index
    %c0_61 = arith.constant 0 : index
    %100 = vector.load %arg7[%c0_60, %c0_61] : memref<32x1xf32, #tpu.memory_space<vmem>>, vector<32x1xf32>
    %101 = vector.broadcast %100 : vector<32x1xf32> to vector<32x256xf32>
    %102 = arith.addf %99, %101 : vector<32x256xf32>
    %103 = arith.addf %102, %1 : vector<32x256xf32>
    %104 = vector.shape_cast %103 : vector<32x256xf32> to vector<1x32x256xf32>
    %c0_62 = arith.constant 0 : index
    %c0_63 = arith.constant 0 : index
    %c0_64 = arith.constant 0 : index
    %105 = vector.load %arg8[%c0_62, %c0_63, %c0_64] : memref<1x32x256xf32, #tpu.memory_space<vmem>>, vector<1x32x256xf32>
    tpu.vector_store %arg8[%c0_62, %c0_63, %c0_64], %104 {strides = array<i32>} : memref<1x32x256xf32, #tpu.memory_space<vmem>>, vector<1x32x256xf32>,
    return
  }
  func.func @transform_0(%arg0: i32) -> (i32, i32, i32) {
    %c0_i32 = arith.constant 0 : i32
    %c0_i32_0 = arith.constant 0 : i32
    %c0_i32_1 = arith.constant 0 : i32
    return %arg0, %c0_i32, %c0_i32_0 : i32, i32, i32
  }
  func.func @transform_1(%arg0: i32) -> (i32, i32) {
    %c0_i32 = arith.constant 0 : i32
    %c0_i32_0 = arith.constant 0 : i32
    %c0_i32_1 = arith.constant 0 : i32
    return %c0_i32, %c0_i32_0 : i32, i32
  }
  func.func @transform_2(%arg0: i32) -> (i32, i32) {
    %c0_i32 = arith.constant 0 : i32
    %c0_i32_0 = arith.constant 0 : i32
    %c0_i32_1 = arith.constant 0 : i32
    return %c0_i32, %c0_i32_0 : i32, i32
  }
  func.func @transform_3(%arg0: i32) -> (i32, i32, i32) {
    %c0_i32 = arith.constant 0 : i32
    %c0_i32_0 = arith.constant 0 : i32
    %c0_i32_1 = arith.constant 0 : i32
    %c0_i32_2 = arith.constant 0 : i32
    return %c0_i32, %c0_i32_0, %c0_i32_1 : i32, i32, i32
  }
  func.func @transform_4(%arg0: i32) -> (i32, i32) {
    %c0_i32 = arith.constant 0 : i32
    %c0_i32_0 = arith.constant 0 : i32
    %c0_i32_1 = arith.constant 0 : i32
    return %c0_i32, %c0_i32_0 : i32, i32
  }
  func.func @transform_5(%arg0: i32) -> (i32, i32) {
    %c0_i32 = arith.constant 0 : i32
    %c0_i32_0 = arith.constant 0 : i32
    %c0_i32_1 = arith.constant 0 : i32
    return %c0_i32, %c0_i32_0 : i32, i32
  }
  func.func @transform_6(%arg0: i32) -> (i32, i32) {
    %c0_i32 = arith.constant 0 : i32
    %c0_i32_0 = arith.constant 0 : i32
    %c0_i32_1 = arith.constant 0 : i32
    return %c0_i32, %c0_i32_0 : i32, i32
  }
  func.func @transform_7(%arg0: i32) -> (i32, i32, i32) {
    %c0_i32 = arith.constant 0 : i32
    %c0_i32_0 = arith.constant 0 : i32
    %c0_i32_1 = arith.constant 0 : i32
    return %arg0, %c0_i32, %c0_i32_0 : i32, i32, i32
  }
}

</mosaic_0001>

<bundles_post_ra>
// kernel: bottleneck_forward.1
= control target key start
LH: loop header
LB: loop body
LE: loop exit
PB: predicated region body
PF: predicated region fallthrough
CT: control target
= control target key end

     0   :  { %s1367_s24 = smov 0   ;;  %s1583_s0 = inlined_call_operand.vmem [shape: f32[2,32,256], index: 0, kind: input, shape index: {}]   ;;  %s1584_s1 = inlined_call_operand.vmem [shape: f32[8,32], index: 1, kind: input, shape index: {}]   ;;  %s1585_s2 = inlined_call_operand.vmem [shape: f32[8,1], index: 2, kind: input, shape index: {}]   ;;  %s1586_s3 = inlined_call_operand.vmem [shape: f32[9,8,8], index: 3, kind: input, shape index: {}]   ;;  %s1587_s4 = inlined_call_operand.vmem [shape: f32[8,1], index: 4, kind: input, shape index: {}]   ;;  %s1588_s5 = inlined_call_operand.vmem [shape: f32[32,8], index: 5, kind: input, shape index: {}]   ;;  %s1589_s6 = inlined_call_operand.vmem [shape: f32[32,1], index: 6, kind: input, shape index: {}]   ;;  %s1590_s7 = inlined_call_operand.vmem [shape: f32[2,32,256], index: 7, kind: output, shape index: {}]  }
   0x1 LB: > { %s1165_s25 = sadd.s32 4294967295, %s1315_s24   ;;  %p1169_p0 = scmp.ge.s32.totalorder %s1315_s24, 1  ;;  %s1315_s24 = sphi %s1367_s24, %s17_s24  }
   0x2   : > { %p237_p1 = scmp.lt.s32.totalorder %s1315_s24, 3 }
   0x4   : > { %p238_p2 = pnand %p1169_p0, %p237_p1 }
   0x5   : > { %p269_p3 = scmp.lt.s32.totalorder (!%p238_p2), %s1165_s25, 1  ;;  %s1319_s11 = smov (!%p238_p2), 113  }
   0x6   : > { %241 = sbr.rel (%p238_p2) target bundleno = 605 (0x25d), region = 48  ;;  %s1320_s12 = smov (!%p238_p2), 111  }
   0x7   : > { %s1321_s13 = smov (!%p238_p2), 1   ;;  %s1322_s14 = smov (!%p238_p2), 127  }
   0x8   : > { %s1323_s15 = smov (!%p238_p2), 17   ;;  %s1324_s16 = smov (!%p238_p2), 15  }
   0x9   : > { %s1325_s17 = smov (!%p238_p2), 16   ;;  %s1326_s18 = smov (!%p238_p2), 112  }
   0xb   : > { %v288_v0 = vld [vmem:[%s1585_s2] sm:$0xff]  ;;  %v342_v1 = vlaneseq  ;;  %v1317_v2 = vmov 0   ;;  %s1592_s25 = smov (!%p269_p3, %s1165_s25), 1  ;;  %v1318_v11 = vmov 0.0   ;;  %vm294_vm4 = vcmask 261120  }
   0xc   : > { %1236 = vset.pattern.permute.xlu0 %v1317_v2  ;;  %1307 = vset.pattern.permute.xlu2 %v1317_v2  ;;  %s1216_s28 = sshll.u32 %s1592_s25, 6  ;;  %v287_v22 = vld [vmem:[%s1584_s1] sm:$0xff]  ;;  %vm390_vm5 = vcmask 908288   ;;  %vm522_vm6 = vcmask 924672   ;;  %vm595_vm7 = vcmask 1039360   ;;  %vm614_vm8 = vcmask 7168  }
   0xd   : > { %291 = vperm.xlu0 %1236, %v288_v0   ;;  %v343_v3 = vand.u32 127, %v342_v1  ;;  %1308 = vset.pattern.permute.xlu1 %v1317_v2  ;;  %s273_s8 = scalar_lea.vmem %s1583_s0, %s1216_s28  ;;  %vm541_vm9 = vcmask 121856   ;;  %vm468_vm10 = vcmask 138240   ;;  %vm410_vm11 = vcmask 130048  }
   0xe   : > { %v1386_v6 = vld [vmem:[%s273_s8 + $0x30] sm:$0xff]  ;;  %v1388_v7 = vld [vmem:[%s273_s8 + $0x38] sm:$0xff]  ;;  %v1390_v8 = vld [vmem:[%s273_s8 + $0x20] sm:$0xff]  ;;  %vm415_vm12 = vcmask 64512   ;;  %vm867_vm13 = vcmask 916480  }
   0xf   : > { %v344_v4 = vadd.s32 128, %v343_v3  ;;  %v349_v5 = vand.u32 15, %v343_v3  ;;  %310 = vmatpush.msra.mxu0 %v1386_v6  ;;  %330 = vmatpush.msra.mxu1 %v1388_v7  ;;  %v1394_v10 = vld [vmem:[%s273_s8 + $0x28] sm:$0xff]  ;;  %v1398_v14 = vld [vmem:[%s273_s8 + $0x10] sm:$0xff]  ;;  %v1400_v15 = vld [vmem:[%s273_s8 + $0x18] sm:$0xff] }
  0x10   : > { %v1406_v18 = vld [vmem:[%s273_s8] sm:$0xff]  ;;  %v1408_v19 = vld [vmem:[%s273_s8 + $0x8] sm:$0xff] }
  0x11   : > { %v356_v9 = vand.u32 15, %v344_v4  ;;  %vm375_vm0 = vcmp.ne.s32.totalorder %v349_v5, 15  ;;  %vm369_vm1 = vcmp.ne.s32.totalorder %v349_v5, 0  ;;  %311 = vmatpush.msra.mxu0 %v1390_v8  ;;  %331 = vmatpush.msra.mxu1 %v1394_v10 }
  0x12   : > { %v1178_v12 = vsel %vm375_vm0, 1.0, %v1318_v11  ;;  %v1176_v13 = vsel %vm369_vm1, 1.0, %v1318_v11 }
  0x13   : > { %vm376_vm2 = vcmp.ne.s32.totalorder %v356_v9, 15  ;;  %vm370_vm3 = vcmp.ne.s32.totalorder %v356_v9, 0  ;;  %312 = vmatpush.msra.mxu0 %v1398_v14  ;;  %332 = vmatpush.msra.mxu1 %v1400_v15 }
  0x14   : > { %v1179_v16 = vsel %vm376_vm2, 1.0, %v1318_v11  ;;  %v1177_v17 = vsel %vm370_vm3, 1.0, %v1318_v11 }
  0x15   : > { %v1242_v20 = vpack.i.bf16 %v1179_v16, %v1178_v12  ;;  %v1237_v21 = vpack.i.bf16 %v1177_v17, %v1176_v13  ;;  %313 = vmatpush.msra.mxu0 %v1406_v18  ;;  %333 = vmatpush.msra.mxu1 %v1408_v19 }
  0x16   : > { %1174 = vmatmul.msk.f32.vlgmr.msra.gmra.mxu0 %vm294_vm4, %v287_v22  ;;  %1175 = vmatmul.msk.f32.vlgmr.msra.gmra.mxu1 %vm294_vm4, %v287_v22 }
  0x17   : > { %1243 = vrot.lane.b32.xlu1 %v1242_v20, %s1319_s11  ;;  %1238 = vrot.lane.b32.xlu0 %v1237_v21, %s1320_s12 }
  0x18   : > { %1253 = vrot.lane.b32.xlu2 %v1242_v20, %s1321_s13 }
  0x1f   : > { %1248 = vrot.lane.b32.xlu1 %v1237_v21, %s1322_s14  ;;  %1263 = vrot.lane.b32.xlu0 %v1242_v20, %s1323_s15 }
  0x20   : > { %1258 = vrot.lane.b32.xlu2 %v1237_v21, %s1324_s16 }
  0x72   : > { %v1254_v33 = vpop.permute.xlu2 %1253 }
  0x73   : > { %v1256_v47 = vunpack.i.h.bf16 %v1254_v33  ;;  %v1255_v48 = vunpack.i.l.bf16 %v1254_v33 }
  0x75   : > { %v718_v53 = vsel %vm614_vm8, %v1255_v48, %v1256_v47  ;;  %v724_v9 = vmul.f32 0.0, %v1256_v47 }
  0x7a   : > { %v1259_v49 = vpop.permute.xlu2 %1258 }
  0x7b   : > { %v1261_v54 = vunpack.i.h.bf16 %v1259_v49  ;;  %v1260_v55 = vunpack.i.l.bf16 %v1259_v49 }
  0x7d   : > { %v789_v61 = vsel %vm541_vm9, %v1260_v55, %v1261_v54  ;;  %v795_v12 = vmul.f32 0.0, %v1261_v54  ;;  %v1185_v54 = vld [vmem:[%s1586_s3 + $0x10] sm:$0xff] }
  0x7f   : > { %v292_v23 = vpop.permute.xlu0 %291 }
  0x89   : > { %v1244_v24 = vpop.permute.xlu1 %1243  ;;  %v1239_v25 = vpop.permute.xlu0 %1238 }
  0x8a   : > { %v1241_v26 = vunpack.i.h.bf16 %v1239_v25  ;;  %v1240_v27 = vunpack.i.l.bf16 %v1239_v25  ;;  %v1246_v28 = vunpack.i.h.bf16 %v1244_v24  ;;  %v1245_v29 = vunpack.i.l.bf16 %v1244_v24  ;;  %v1003_v24 = vld [vmem:[%s1589_s6 + $0x18] sm:$0xff] }
  0x8c   : > { %v391_v30 = vsel %vm390_vm5, %v1240_v27, %v1241_v26  ;;  %v395_v34 = vmul.f32 0.0, %v1240_v27  ;;  %v523_v37 = vsel %vm522_vm6, %v1245_v29, %v1246_v28  ;;  %v527_v40 = vmul.f32 0.0, %v1245_v29 }
  0x91   : > { %v1249_v41 = vpop.permute.xlu1 %1248  ;;  %v1264_v2 = vpop.permute.xlu0 %1263 }
  0x92   : > { %v1251_v44 = vunpack.i.h.bf16 %v1249_v41  ;;  %v1250_v45 = vunpack.i.l.bf16 %v1249_v41  ;;  %v1266_v4 = vunpack.i.h.bf16 %v1264_v2  ;;  %v1265_v5 = vunpack.i.l.bf16 %v1264_v2 }
  0x93   : > { %v315_v31 = vpop.f32.mrf.mxu0  ;;  %v335_v32 = vpop.f32.mrf.mxu1 }
  0x94   : > { %v1424_v35 = vadd.f32 %v315_v31, %v292_v23  ;;  %v1426_v36 = vadd.f32 %v335_v32, %v292_v23  ;;  %v596_v51 = vsel %vm595_vm7, %v1250_v45, %v1251_v44  ;;  %v600_v56 = vmul.f32 0.0, %v1250_v45  ;;  %v1000_v23 = vld [vmem:[%s1589_s6] sm:$0xff]  ;;  %v1180_v32 = vld [vmem:[%s1586_s3 + $0x8] sm:$0xff] }
  0x95   : > { %v921_v13 = vsel %vm468_vm10, %v1265_v5, %v1266_v4  ;;  %v927_v22 = vmul.f32 0.0, %v1266_v4  ;;  %v398_v45 = vld [vmem:[%s1586_s3] sm:$0xff] }
  0x96   : > { %408 = vrot.lane.b32.xlu2 %v1426_v36, %s1325_s17  ;;  %v1267_v38 = vpack.i.bf16 %v1424_v35, %v1318_v11  ;;  %v396_v39 = vmul.f32 %v391_v30, %v1424_v35  ;;  %v528_v43 = vmul.f32 %v523_v37, %v1424_v35  ;;  %v397_v50 = vmul.f32 %v1241_v26, %v1426_v36 }
  0x97   : > { %v529_v52 = vmul.f32 %v1246_v28, %v1426_v36  ;;  %v601_v57 = vmul.f32 %v596_v51, %v1424_v35  ;;  %v602_v58 = vmul.f32 %v1251_v44, %v1426_v36  ;;  %v722_v59 = vmul.f32 %v1255_v48, %v1424_v35 }
  0x98   : > { %1268 = vrot.lane.b32.xlu1 %v1267_v38, %s1325_s17  ;;  %v1272_v42 = vpack.i.bf16 %v396_v39, %v395_v34  ;;  %v1277_v46 = vpack.i.bf16 %v528_v43, %v527_v40  ;;  %v723_v60 = vmul.f32 %v718_v53, %v1426_v36  ;;  %v793_v0 = vmul.f32 %v1260_v55, %v1424_v35  ;;  %v988_v55 = vld [vmem:[%s1587_s4] sm:$0xff]  ;;  %s1562_s17 = scalar_lea.vmem %s1590_s7, %s1216_s28 }
  0x99   : > { %v1282_v62 = vpack.i.bf16 %v601_v57, %v600_v56  ;;  %v794_v1 = vmul.f32 %v789_v61, %v1426_v36  ;;  %v925_v16 = vmul.f32 %v1265_v5, %v1424_v35  ;;  %v926_v17 = vmul.f32 %v921_v13, %v1426_v36 }
  0x9a   : > { %1273 = vrot.lane.b32.xlu0 %v1272_v42, %s1323_s15  ;;  %v1287_v63 = vpack.i.bf16 %v723_v60, %v722_v59  ;;  %v1292_v20 = vpack.i.bf16 %v1426_v36, %v1424_v35 }
  0x9b   : > { %v1297_v3 = vpack.i.bf16 %v794_v1, %v793_v0  ;;  %v1302_v21 = vpack.i.bf16 %v926_v17, %v925_v16  ;;  %v1191_v1 = vld [vmem:[%s1586_s3 + $0x20] sm:$0xff]  ;;  %v1197_v16 = vld [vmem:[%s1586_s3 + $0x30] sm:$0xff] }
  0x9e   : > { %1278 = vrot.lane.b32.xlu2 %v1277_v46, %s1324_s16 }
  0xa0   : > { %466 = vrot.lane.b32.xlu1 %v397_v50, %s1323_s15 }
  0xa2   : > { %539 = vrot.lane.b32.xlu0 %v529_v52, %s1324_s16 }
  0xa6   : > { %612 = vrot.lane.b32.xlu2 %v602_v58, %s1321_s13  ;;  %v1188_v58 = vld [vmem:[%s1586_s3 + $0x18] sm:$0xff] }
  0xa8   : > { %1283 = vrot.lane.b32.xlu1 %v1282_v62, %s1321_s13  ;;  %v1002_v62 = vld [vmem:[%s1589_s6 + $0x10] sm:$0xff] }
  0xaa   : > { %1288 = vrot.lane.b32.xlu0 %v1287_v63, %s1322_s14 }
  0xae   : > { %1298 = vrot.lane.b32.xlu2 %v1297_v3, %s1319_s11  ;;  %v1194_v3 = vld [vmem:[%s1586_s3 + $0x28] sm:$0xff] }
  0xb0   : > { %734 = vrot.lane.b32.xlu1 %v724_v9, %s1322_s14 }
  0xb2   : > { %805 = vrot.lane.b32.xlu0 %v795_v12, %s1319_s11 }
  0xb6   : > { %865 = vrot.lane.b32.xlu2 %v1318_v11, %s1326_s18 }
  0xb8   : > { %1293 = vrot.lane.b32.xlu1 %v1292_v20, %s1326_s18 }
  0xba   : > { %1303 = vrot.lane.b32.xlu0 %v1302_v21, %s1320_s12 }
  0xbe   : > { %991 = vperm.xlu2 %1307, %v988_v55  }
  0xc0   : > { %937 = vrot.lane.b32.xlu1 %v927_v22, %s1320_s12 }
  0xc2   : > { %1006 = vperm.xlu0 %1236, %v1000_v23   ;;  %v1200_v23 = vld [vmem:[%s1586_s3 + $0x38] sm:$0xff] }
  0xc6   : > { %1016 = vperm.xlu2 %1307, %v1002_v62  }
  0xca   : > { %1021 = vperm.xlu0 %1236, %v1003_v24  }
  0xf0   : > { %v409_v25 = vpop.permute.xlu2 %408 }
  0xf8   : > { %v1279_v26 = vpop.permute.xlu2 %1278 }
  0xf9   : > { %v1281_v29 = vunpack.i.h.bf16 %v1279_v26  ;;  %v1280_v30 = vunpack.i.l.bf16 %v1279_v26 }
  0xfb   : > { %v542_v41 = vsel %vm541_vm9, %v1280_v30, %v1281_v29 }
 0x100   : > { %v613_v39 = vpop.permute.xlu2 %612 }
 0x108   : > { %v1299_v47 = vpop.permute.xlu2 %1298 }
 0x109   : > { %v1301_v51 = vunpack.i.h.bf16 %v1299_v47  ;;  %v1300_v52 = vunpack.i.l.bf16 %v1299_v47 }
 0x10a   : > { %v1269_v11 = vpop.permute.xlu1 %1268 }
 0x10b   : > { %v1271_v27 = vunpack.i.h.bf16 %v1269_v11  ;;  %v1270_v28 = vunpack.i.l.bf16 %v1269_v11  ;;  %v807_v60 = vsel %vm522_vm6, %v1300_v52, %v1301_v51  ;;  %v1203_v11 = vld [vmem:[%s1586_s3 + $0x40] sm:$0xff] }
 0x10c   : > { %v1274_v31 = vpop.permute.xlu0 %1273 }
 0x10d   : > { %v1276_v33 = vunpack.i.h.bf16 %v1274_v31  ;;  %v1275_v34 = vunpack.i.l.bf16 %v1274_v31  ;;  %v411_v37 = vsel %vm410_vm11, %v1270_v28, %v1271_v27  ;;  %v412_v38 = vsel %vm410_vm11, %v1271_v27, %v409_v25 }
 0x10e   : > { %434 = vmatpush.msrb.mxu0 %v411_v37  ;;  %454 = vmatpush.msrb.mxu1 %v412_v38 }
 0x10f   : > { %1181 = vmatmul.msk.f32.vlgmr.msrb.gmra.mxu0 %vm415_vm12, %v1180_v32  ;;  %1182 = vmatmul.msk.f32.vlgmr.msrb.gmra.mxu1 %vm415_vm12, %v1180_v32  ;;  %v469_v40 = vsel %vm468_vm10, %v1275_v34, %v1276_v33 }
 0x110   : > { %491 = vmatpush.msra.mxu0 %v469_v40  ;;  %v866_v5 = vpop.permute.xlu2 %865 }
 0x112   : > { %564 = vmatpush.msrb.mxu0 %v542_v41  ;;  %v467_v42 = vpop.permute.xlu1 %466 }
 0x113   : > { %v470_v43 = vsel %vm468_vm10, %v1276_v33, %v467_v42 }
 0x114   : > { %v540_v44 = vpop.permute.xlu0 %539  ;;  %511 = vmatpush.msra.mxu1 %v470_v43 }
 0x115   : > { %v543_v46 = vsel %vm541_vm9, %v1281_v29, %v540_v44 }
 0x116   : > { %584 = vmatpush.msrb.mxu1 %v543_v46 }
 0x117   : > { %1183 = vmatmul.msk.f32.vlgmr.msra.gmra.mxu0 %vm415_vm12, %v398_v45  ;;  %1184 = vmatmul.msk.f32.vlgmr.msra.gmra.mxu1 %vm415_vm12, %v398_v45 }
 0x118   : > { %684 = vmatpush.msra.mxu0 %v1424_v35  ;;  %704 = vmatpush.msra.mxu1 %v1426_v36  ;;  %v992_v62 = vpop.permute.xlu2 %991 }
 0x11a   : > { %v1284_v48 = vpop.permute.xlu1 %1283 }
 0x11b   : > { %v1286_v49 = vunpack.i.h.bf16 %v1284_v48  ;;  %v1285_v50 = vunpack.i.l.bf16 %v1284_v48 }
 0x11c   : > { %v1289_v53 = vpop.permute.xlu0 %1288 }
 0x11d   : > { %v1291_v56 = vunpack.i.h.bf16 %v1289_v53  ;;  %v1290_v57 = vunpack.i.l.bf16 %v1289_v53  ;;  %v615_v35 = vsel %vm614_vm8, %v1285_v50, %v1286_v49  ;;  %v616_v36 = vsel %vm614_vm8, %v1286_v49, %v613_v39 }
 0x11e   : > { %637 = vmatpush.msra.mxu2 %v615_v35  ;;  %657 = vmatpush.msra.mxu3 %v616_v36 }
 0x11f   : > { %1186 = vmatmul.msk.f32.vlgmr.msrb.gmra.mxu0 %vm415_vm12, %v1185_v54  ;;  %1187 = vmatmul.msk.f32.vlgmr.msrb.gmra.mxu1 %vm415_vm12, %v1185_v54  ;;  %v736_v59 = vsel %vm595_vm7, %v1290_v57, %v1291_v56  ;;  %v1001_v57 = vld [vmem:[%s1589_s6 + $0x8] sm:$0xff] }
 0x120   : > { %1189 = vmatmul.msk.f32.vlgmr.msra.gmra.mxu2 %vm415_vm12, %v1188_v58  ;;  %1190 = vmatmul.msk.f32.vlgmr.msra.gmra.mxu3 %vm415_vm12, %v1188_v58 }
 0x121   : > { %829 = vmatpush.msrb.mxu0 %v807_v60  ;;  %758 = vmatpush.msrb.mxu2 %v736_v59 }
 0x122   : > { %v735_v61 = vpop.permute.xlu1 %734  ;;  %1011 = vperm.xlu1 %1308, %v1001_v57  }
 0x123   : > { %v737_v63 = vsel %vm595_vm7, %v1291_v56, %v735_v61 }
 0x124   : > { %v806_v0 = vpop.permute.xlu0 %805  ;;  %778 = vmatpush.msrb.mxu3 %v737_v63 }
 0x125   : > { %v808_v2 = vsel %vm522_vm6, %v1301_v51, %v806_v0 }
 0x126   : > { %849 = vmatpush.msrb.mxu1 %v808_v2  ;;  %v997_v2 = vld [vmem:[%s1588_s5 + $0x8] sm:$0xff] }
 0x127   : > { %1192 = vmatmul.msk.f32.vlgmr.msra.gmra.mxu0 %vm415_vm12, %v1191_v1  ;;  %1193 = vmatmul.msk.f32.vlgmr.msra.gmra.mxu1 %vm415_vm12, %v1191_v1  ;;  %v996_v1 = vld [vmem:[%s1588_s5] sm:$0xff] }
 0x128   : > { %1195 = vmatmul.msk.f32.vlgmr.msrb.gmra.mxu2 %vm415_vm12, %v1194_v3  ;;  %1196 = vmatmul.msk.f32.vlgmr.msrb.gmra.mxu3 %vm415_vm12, %v1194_v3  ;;  %v998_v3 = vld [vmem:[%s1588_s5 + $0x10] sm:$0xff] }
 0x12a   : > { %v1294_v4 = vpop.permute.xlu1 %1293 }
 0x12b   : > { %v1296_v9 = vunpack.i.h.bf16 %v1294_v4  ;;  %v1295_v12 = vunpack.i.l.bf16 %v1294_v4  ;;  %v999_v4 = vld [vmem:[%s1588_s5 + $0x18] sm:$0xff] }
 0x12c   : > { %v1304_v13 = vpop.permute.xlu0 %1303 }
 0x12d   : > { %v869_v17 = vsel %vm867_vm13, %v1296_v9, %v866_v5  ;;  %v1306_v20 = vunpack.i.h.bf16 %v1304_v13  ;;  %v1305_v21 = vunpack.i.l.bf16 %v1304_v13  ;;  %v868_v22 = vsel %vm867_vm13, %v1295_v12, %v1296_v9 }
 0x12e   : > { %890 = vmatpush.msra.mxu2 %v868_v22  ;;  %910 = vmatpush.msra.mxu3 %v869_v17 }
 0x12f   : > { %1198 = vmatmul.msk.f32.vlgmr.msrb.gmra.mxu0 %vm415_vm12, %v1197_v16  ;;  %1199 = vmatmul.msk.f32.vlgmr.msrb.gmra.mxu1 %vm415_vm12, %v1197_v16  ;;  %v939_v24 = vsel %vm390_vm5, %v1305_v21, %v1306_v20 }
 0x130   : > { %1201 = vmatmul.msk.f32.vlgmr.msra.gmra.mxu2 %vm415_vm12, %v1200_v23  ;;  %1202 = vmatmul.msk.f32.vlgmr.msra.gmra.mxu3 %vm415_vm12, %v1200_v23 }
 0x131   : > { %961 = vmatpush.msra.mxu0 %v939_v24 }
 0x132   : > { %v938_v25 = vpop.permute.xlu1 %937 }
 0x133   : > { %v940_v26 = vsel %vm390_vm5, %v1306_v20, %v938_v25 }
 0x134   : > { %981 = vmatpush.msra.mxu1 %v940_v26  ;;  %v1007_v5 = vpop.permute.xlu0 %1006 }
 0x137   : > { %1204 = vmatmul.msk.f32.vlgmr.msra.gmra.mxu0 %vm415_vm12, %v1203_v11  ;;  %1205 = vmatmul.msk.f32.vlgmr.msra.gmra.mxu1 %vm415_vm12, %v1203_v11 }
 0x18c   : > { %v436_v27 = vpop.f32.mrf.mxu0  ;;  %v456_v28 = vpop.f32.mrf.mxu1 }
 0x194   : > { %v493_v29 = vpop.f32.mrf.mxu0  ;;  %v513_v30 = vpop.f32.mrf.mxu1 }
 0x195   : > { %v494_v37 = vadd.f32 %v493_v29, %v436_v27  ;;  %v514_v38 = vadd.f32 %v513_v30, %v456_v28  ;;  %v1012_v21 = vpop.permute.xlu1 %1011  ;;  %v1017_v27 = vpop.permute.xlu2 %1016 }
 0x19c   : > { %v566_v31 = vpop.f32.mrf.mxu0  ;;  %v586_v32 = vpop.f32.mrf.mxu1 }
 0x19d   : > { %v589_v41 = vadd.f32 %v566_v31, %v494_v37  ;;  %v590_v42 = vadd.f32 %v586_v32, %v514_v38  ;;  %v1022_v32 = vpop.permute.xlu0 %1021 }
 0x1a3   : > { %v639_v33 = vpop.f32.mrf.mxu2  ;;  %v659_v34 = vpop.f32.mrf.mxu3 }
 0x1a4   : > { %v686_v39 = vpop.f32.mrf.mxu0  ;;  %v706_v40 = vpop.f32.mrf.mxu1  ;;  %v662_v43 = vadd.f32 %v639_v33, %v589_v41  ;;  %v663_v44 = vadd.f32 %v659_v34, %v590_v42 }
 0x1a6   : > { %v709_v47 = vadd.f32 %v686_v39, %v662_v43  ;;  %v710_v48 = vadd.f32 %v706_v40, %v663_v44 }
 0x1ab   : > { %v760_v45 = vpop.f32.mrf.mxu2  ;;  %v780_v46 = vpop.f32.mrf.mxu3 }
 0x1ac   : > { %v831_v49 = vpop.f32.mrf.mxu0  ;;  %v851_v50 = vpop.f32.mrf.mxu1  ;;  %v783_v51 = vadd.f32 %v760_v45, %v709_v47  ;;  %v784_v52 = vadd.f32 %v780_v46, %v710_v48 }
 0x1ae   : > { %v854_v53 = vadd.f32 %v831_v49, %v783_v51  ;;  %v855_v54 = vadd.f32 %v851_v50, %v784_v52 }
 0x1b3   : > { %v892_v55 = vpop.f32.mrf.mxu2  ;;  %v912_v56 = vpop.f32.mrf.mxu3 }
 0x1b4   : > { %v915_v35 = vadd.f32 %v892_v55, %v854_v53  ;;  %v916_v36 = vadd.f32 %v912_v56, %v855_v54  ;;  %v963_v58 = vpop.f32.mrf.mxu0  ;;  %v983_v59 = vpop.f32.mrf.mxu1 }
 0x1b6   : > { %v986_v60 = vadd.f32 %v963_v58, %v915_v35  ;;  %v987_v61 = vadd.f32 %v983_v59, %v916_v36 }
 0x1b8   : > { %v994_v63 = vadd.f32 %v992_v62, %v986_v60  ;;  %v995_v0 = vadd.f32 %v992_v62, %v987_v61 }
 0x1ba   : > { %1051 = vmatpush.msrb.mxu2 %v994_v63  ;;  %1080 = vmatpush.msrb.mxu3 %v995_v0 }
 0x1bb   : > { %1206 = vmatmul.msk.f32.vlgmr.msrb.gmra.mxu2 %vm415_vm12, %v996_v1  ;;  %1210 = vmatmul.msk.f32.vlgmr.msrb.gmra.mxu3 %vm415_vm12, %v996_v1 }
 0x1c3   : > { %1207 = vmatmul.msk.f32.gmra.mxu2 %vm415_vm12, %v997_v2  ;;  %1211 = vmatmul.msk.f32.gmra.mxu3 %vm415_vm12, %v997_v2 }
 0x1cb   : > { %1208 = vmatmul.msk.f32.gmra.mxu2 %vm415_vm12, %v998_v3  ;;  %1212 = vmatmul.msk.f32.gmra.mxu3 %vm415_vm12, %v998_v3 }
 0x1d3   : > { %1209 = vmatmul.msk.f32.gmra.mxu2 %vm415_vm12, %v999_v4  ;;  %1213 = vmatmul.msk.f32.gmra.mxu3 %vm415_vm12, %v999_v4 }
 0x23e   : > { %v1053_v9 = vpop.f32.mrf.mxu2  ;;  %v1082_v12 = vpop.f32.mrf.mxu3 }
 0x23f   : > { %v1054_v13 = vadd.f32 %v1053_v9, %v1007_v5  ;;  %v1083_v16 = vadd.f32 %v1082_v12, %v1007_v5 }
 0x241   : > { %v1094_v17 = vadd.f32 %v1054_v13, %v1406_v18  ;;  %v1095_v20 = vadd.f32 %v1083_v16, %v1408_v19 }
 0x243   : > { %1102 = vst [vmem:[%s1562_s17] sm:$0xff] %v1094_v17 }
 0x244   : > { %1103 = vst [vmem:[%s1562_s17 + $0x8] sm:$0xff] %v1095_v20 }
 0x246   : > { %v1056_v22 = vpop.f32.mrf.mxu2  ;;  %v1085_v23 = vpop.f32.mrf.mxu3 }
 0x247   : > { %v1057_v24 = vadd.f32 %v1056_v22, %v1012_v21  ;;  %v1086_v25 = vadd.f32 %v1085_v23, %v1012_v21 }
 0x249   : > { %v1096_v26 = vadd.f32 %v1057_v24, %v1398_v14  ;;  %v1097_v11 = vadd.f32 %v1086_v25, %v1400_v15 }
 0x24b   : > { %1104 = vst [vmem:[%s1562_s17 + $0x10] sm:$0xff] %v1096_v26 }
 0x24c   : > { %1105 = vst [vmem:[%s1562_s17 + $0x18] sm:$0xff] %v1097_v11 }
 0x24e   : > { %v1059_v18 = vpop.f32.mrf.mxu2  ;;  %v1088_v19 = vpop.f32.mrf.mxu3 }
 0x24f   : > { %v1060_v28 = vadd.f32 %v1059_v18, %v1017_v27  ;;  %v1089_v29 = vadd.f32 %v1088_v19, %v1017_v27 }
 0x251   : > { %v1098_v30 = vadd.f32 %v1060_v28, %v1390_v8  ;;  %v1099_v31 = vadd.f32 %v1089_v29, %v1394_v10 }
 0x253   : > { %1106 = vst [vmem:[%s1562_s17 + $0x20] sm:$0xff] %v1098_v30 }
 0x254   : > { %1107 = vst [vmem:[%s1562_s17 + $0x28] sm:$0xff] %v1099_v31 }
 0x256   : > { %v1062_v33 = vpop.f32.mrf.mxu2  ;;  %v1091_v14 = vpop.f32.mrf.mxu3 }
 0x257   : > { %v1063_v34 = vadd.f32 %v1062_v33, %v1022_v32  ;;  %v1092_v15 = vadd.f32 %v1091_v14, %v1022_v32 }
 0x259   : > { %v1100_v37 = vadd.f32 %v1063_v34, %v1386_v6  ;;  %v1101_v38 = vadd.f32 %v1092_v15, %v1388_v7 }
 0x25b   : > { %1108 = vst [vmem:[%s1562_s17 + $0x30] sm:$0xff] %v1100_v37 }
 0x25c   : > { %1109 = vst [vmem:[%s1562_s17 + $0x38] sm:$0xff] %v1101_v38 }
 0x25d PF: > { %s17_s24 = sadd.s32 1, %s1315_s24  }
 0x25e   : > { %p14_p4 = scmp.ge.s32.totalorder %s17_s24, 4  }
 0x260   :  { %16 = sbr.rel (!%p14_p4) target bundleno = 1 (0x1), region = 86 }

</bundles_post_ra>
